<compile_context>
chip_gen: v7x
topology: tpu7x:2x2x1
jax: 0.10.0
libtpu: 0.0.40
codegen_flags: <defaults>
</compile_context>

<pallas_src>
import functools

import jax
import jax.numpy as jnp
from jax.experimental import pallas as pl
from jax.experimental.pallas import tpu as pltpu

_LANE = 128
_VMEM_BUDGET = 48 * 1024 * 1024  # v7x-safe double-buffered footprint cap.


def _round_up(a, b):
    return ((a + b - 1) // b) * b


def _sublane(dtype):
    # dtype-aware sublane tile: f32 -> 8, bf16 -> 16, int8/fp8 -> 32.
    return {4: 8, 2: 16, 1: 32}.get(jnp.dtype(dtype).itemsize, 8)


# --------------------------- kernels ---------------------------------------
# Grid is (M blocks, N blocks, K blocks) with K innermost ("arbitrary").
# The output BlockSpec ignores k, so the output tile stays resident in VMEM
# across the reduction and is written back to HBM once per (i, j).

def _kernel_out_acc(x_ref, wt_ref, o_ref):
    """f32 output, no bias: accumulate directly into the resident o_ref."""
    k = pl.program_id(2)
    d = jnp.dot(x_ref[...], wt_ref[...], preferred_element_type=jnp.float32)

    @pl.when(k == 0)
    def _():
        o_ref[...] = d

    @pl.when(k != 0)
    def _():
        o_ref[...] += d


def _kernel_out_acc_bias(x_ref, wt_ref, b_ref, o_ref):
    """f32 output with bias: accumulate into o_ref, add f32 bias at the end."""
    k = pl.program_id(2)
    d = jnp.dot(x_ref[...], wt_ref[...], preferred_element_type=jnp.float32)

    @pl.when(k == 0)
    def _():
        o_ref[...] = d

    @pl.when(k != 0)
    def _():
        o_ref[...] += d

    @pl.when(k == pl.num_programs(2) - 1)
    def _():
        o_ref[...] = o_ref[...] + b_ref[...]


def _kernel_scratch_acc(x_ref, wt_ref, o_ref, acc_ref):
    """Non-f32 output, no bias: f32 VMEM accumulator, single final cast."""
    k = pl.program_id(2)
    d = jnp.dot(x_ref[...], wt_ref[...], preferred_element_type=jnp.float32)

    @pl.when(k == 0)
    def _():
        acc_ref[...] = d

    @pl.when(k != 0)
    def _():
        acc_ref[...] += d

    @pl.when(k == pl.num_programs(2) - 1)
    def _():
        o_ref[...] = acc_ref[...].astype(o_ref.dtype)


def _kernel_scratch_acc_bias(x_ref, wt_ref, b_ref, o_ref, acc_ref):
    """Non-f32 output with bias: f32 acc + f32 bias, single final cast."""
    k = pl.program_id(2)
    d = jnp.dot(x_ref[...], wt_ref[...], preferred_element_type=jnp.float32)

    @pl.when(k == 0)
    def _():
        acc_ref[...] = d

    @pl.when(k != 0)
    def _():
        acc_ref[...] += d

    @pl.when(k == pl.num_programs(2) - 1)
    def _():
        o_ref[...] = (acc_ref[...] + b_ref[...]).astype(o_ref.dtype)


# --------------------------- tiling helpers ---------------------------------

def _cap_tiles_to_budget(tm, tn, tk, in_b, w_b, out_b):
    """Shrink max tile sizes until the double-buffered footprint fits v7x."""
    def footprint(a, b, c):
        return 2 * (a * c * in_b + c * b * w_b + a * b * out_b) + a * b * 4

    while footprint(tm, tn, tk) > _VMEM_BUDGET:
        if tk > 256:
            tk //= 2
        elif tn > 256:
            tn //= 2
        elif tm > 256:
            tm //= 2
        else:
            break
    return tm, tn, tk


def _pick_tile(dim, tmax):
    """Pick (tile, padded_dim) for one dimension.

    Full-dim tile if it fits (no padding ever); else the largest 128-aligned
    divisor of dim that is >= 256 and <= tmax (no padding); else tmax with the
    dimension padded up (last resort).
    """
    if dim <= tmax:
        return int(dim), int(dim)
    t = (tmax // _LANE) * _LANE
    while t >= 256:
        if dim % t == 0:
            return int(t), int(dim)
        t -= _LANE
    return int(tmax), int(_round_up(dim, tmax))


def _split_single_block(dim_pad, tile, align):
    """If the whole dim is one block, split it into >=2 aligned blocks."""
    if dim_pad % align != 0 or dim_pad < 2 * align:
        return tile
    t = (dim_pad // 2 // align) * align
    while t >= align:
        if dim_pad % t == 0:
            return int(t)
        t -= align
    return tile


# --------------------------- pallas driver -----------------------------------

@functools.partial(jax.jit, static_argnames=("tm_max", "tn_max", "tk_max"))
def _aug_linear_pallas(x2d, weight, bias, *, tm_max, tn_max, tk_max):
    M, K = x2d.shape
    N = weight.shape[0]

    # One-time HBM-side transpose to (K, N): in-kernel contraction is NN form.
    w_t = weight.T

    in_b = jnp.dtype(x2d.dtype).itemsize
    w_b = jnp.dtype(w_t.dtype).itemsize
    out_dtype = jnp.promote_types(x2d.dtype, w_t.dtype)
    out_b = jnp.dtype(out_dtype).itemsize
    acc_in_out = out_dtype == jnp.float32
    has_bias = bias is not None

    tm_max, tn_max, tk_max = _cap_tiles_to_budget(
        tm_max, tn_max, tk_max, in_b, w_b, out_b)

    tm, M_pad = _pick_tile(M, tm_max)
    tn, N_pad = _pick_tile(N, tn_max)
    tk, K_pad = _pick_tile(K, tk_max)

    # Keep both v7x TensorCores busy: avoid a 1x1 parallel grid on non-tiny
    # problems by splitting N (preferred) or M.
    if M_pad // tm == 1 and N_pad // tn == 1 and max(M_pad, N_pad) >= 256:
        new_tn = _split_single_block(N_pad, tn, _LANE)
        if new_tn != tn:
            tn = new_tn
        else:
            tm = _split_single_block(M_pad, tm, _sublane(x2d.dtype))

    # Pad only when unavoidable (non-divisible dims larger than the max tile).
    if (M_pad, K_pad) != (M, K):
        x2d = jnp.pad(x2d, ((0, M_pad - M), (0, K_pad - K)))
    if (K_pad, N_pad) != (K, N):
        w_t = jnp.pad(w_t, ((0, K_pad - K), (0, N_pad - N)))

    grid = (M_pad // tm, N_pad // tn, K_pad // tk)
    gm, gn, gk = grid

    x_spec = pl.BlockSpec((tm, tk), lambda i, j, k: (i, k))
    w_spec = pl.BlockSpec((tk, tn), lambda i, j, k: (k, j))
    o_spec = pl.BlockSpec((tm, tn), lambda i, j, k: (i, j))

    scratch = [] if acc_in_out else [pltpu.VMEM((tm, tn), jnp.float32)]

    # Explicit VMEM limit so the compiler keeps full double-buffering depth.
    needed = 2 * (tm * tk * in_b + tk * tn * w_b + tm * tn * out_b)
    if not acc_in_out:
        needed += tm * tn * 4
    if has_bias:
        needed += 2 * tn * 4
    vmem_limit = int(min(max(needed + (4 << 20), 32 << 20), _VMEM_BUDGET))

    cparams = pltpu.CompilerParams(
        dimension_semantics=("parallel", "parallel", "arbitrary"),
        vmem_limit_bytes=vmem_limit,
    )

    cost = pl.CostEstimate(
        flops=2 * M_pad * N_pad * K_pad,
        transcendentals=0,
        bytes_accessed=(in_b * M_pad * K_pad * gn
                        + w_b * K_pad * N_pad * gm
                        + out_b * M_pad * N_pad
                        + (4 * N_pad if has_bias else 0)),
    )

    out_shape = jax.ShapeDtypeStruct((M_pad, N_pad), out_dtype)

    if has_bias:
        b2d = bias.astype(jnp.float32).reshape(1, N)
        if N_pad != N:
            b2d = jnp.pad(b2d, ((0, 0), (0, N_pad - N)))
        b_spec = pl.BlockSpec((1, tn), lambda i, j, k: (0, j))
        kern = _kernel_out_acc_bias if acc_in_out else _kernel_scratch_acc_bias
        in_specs = [x_spec, w_spec, b_spec]
        args = (x2d, w_t, b2d)
    else:
        kern = _kernel_out_acc if acc_in_out else _kernel_scratch_acc
        in_specs = [x_spec, w_spec]
        args = (x2d, w_t)

    out2d = pl.pallas_call(
        kern,
        out_shape=out_shape,
        grid_spec=pltpu.PrefetchScalarGridSpec(
            num_scalar_prefetch=0,
            grid=grid,
            in_specs=in_specs,
            out_specs=o_spec,
            scratch_shapes=scratch,
        ),
        compiler_params=cparams,
        cost_estimate=cost,
    )(*args)

    if (M_pad, N_pad) != (M, N):
        out2d = out2d[:M, :N]
    return out2d


# --------------------------- public wrapper ----------------------------------

def aug_linear_forward(x, weight, bias=None, *, tm=512, tn=512, tk=None,
                       use_pallas=None):
    """Pallas implementation of aug_Linear.forward (prob=None path).

    x: (..., in_channels); weight: (out_channels, in_channels) [PyTorch layout];
    bias: (out_channels,) or None.
    """
    out_ch, in_ch = weight.shape
    lead = x.shape[:-1]
    x2d = x.reshape(-1, in_ch)
    M = x2d.shape[0]

    if tk is None:
        tk = 1024 if jnp.dtype(x.dtype).itemsize >= 4 else 2048

    if use_pallas is None:
        # Small-problem dispatch: padded / pipelined Pallas loses to plain XLA
        # on tiny K/N or tiny total FLOPs on every TPU generation.
        tiny = (in_ch < 256 and out_ch < 256) or (2 * M * in_ch * out_ch < (1 << 24))
        use_pallas = not tiny

    if use_pallas:
        out2d = _aug_linear_pallas(x2d, weight, bias,
                                   tm_max=int(tm), tn_max=int(tn), tk_max=int(tk))
    else:
        out2d = jnp.dot(x2d, weight.T)
        if bias is not None:
            out2d = out2d + bias

    return out2d.reshape(*lead, out_ch)


if __name__ == "__main__":
    key = jax.random.PRNGKey(0)
    k_x, k_w = jax.random.split(key)

    # Module config: aug_Linear(in_channels=32, out_channels=32, bias=True)
    batch, seq, in_channels, out_channels = 2, 8, 32, 32

    weight = jax.random.normal(k_w, (out_channels, in_channels), jnp.float32)
    bias = jnp.zeros((out_channels,), jnp.float32)
    x = jax.random.normal(k_x, (batch, seq, in_channels), jnp.float32)

    # Force the Pallas path so the kernel itself is exercised at this small
    # shape (the auto dispatcher would route it to the XLA fallback).
    out = jax.block_until_ready(aug_linear_forward(x, weight, bias, use_pallas=True))
    ref = x @ weight.T + bias
    assert out.shape == (batch, seq, out_channels)
    assert jnp.allclose(out, ref, atol=1e-4, rtol=1e-4)

    # No-bias path (f32 accumulate-directly-into-output kernel variant).
    out_nb = jax.block_until_ready(aug_linear_forward(x, weight, None, use_pallas=True))
    assert jnp.allclose(out_nb, x @ weight.T, atol=1e-4, rtol=1e-4)

    # bf16 inputs exercise the f32 VMEM-scratch accumulator variant.
    x16 = x.astype(jnp.bfloat16)
    w16 = weight.astype(jnp.bfloat16)
    out16 = jax.block_until_ready(aug_linear_forward(x16, w16, bias, use_pallas=True))
    ref16 = x16.astype(jnp.float32) @ w16.astype(jnp.float32).T + bias
    assert out16.dtype == jnp.bfloat16
    assert jnp.allclose(out16.astype(jnp.float32), ref16, atol=3e-2, rtol=3e-2)

    # Auto dispatch: tiny problem routes to the XLA fallback.
    out_auto = jax.block_until_ready(aug_linear_forward(x, weight, bias))
    assert jnp.allclose(out_auto, ref, atol=1e-4, rtol=1e-4)

    print("KERNEL_OK")
</pallas_src>

<mosaic_0001>
module attributes {stable_mosaic.version = 11 : i64} {
  func.func @_kernel_out_acc_bias(%arg0: i32, %arg1: i32, %arg2: i32, %arg3: memref<16x32xf32, #tpu.memory_space<vmem>>, %arg4: memref<32x32xf32, #tpu.memory_space<vmem>>, %arg5: memref<1x32xf32, #tpu.memory_space<vmem>>, %arg6: memref<16x32xf32, #tpu.memory_space<vmem>>) attributes {dimension_semantics = [#tpu.dimension_semantics<parallel>, #tpu.dimension_semantics<parallel>, #tpu.dimension_semantics<arbitrary>], iteration_bounds = array<i64: 1, 1, 1>, scalar_prefetch = 0 : i64, scratch_operands = 0 : i64, tpu.core_type = #tpu.core_type<tc>, window_params = [{transform_indices = @transform_0, window_bounds = array<i64: 16, 32>}, {transform_indices = @transform_1, window_bounds = array<i64: 32, 32>}, {transform_indices = @transform_2, window_bounds = array<i64: 1, 32>}, {transform_indices = @transform_3, window_bounds = array<i64: 16, 32>}]} {
    %c0 = arith.constant 0 : index
    %c0_0 = arith.constant 0 : index
    %0 = vector.load %arg3[%c0, %c0_0] : memref<16x32xf32, #tpu.memory_space<vmem>>, vector<16x32xf32>
    %c0_1 = arith.constant 0 : index
    %c0_2 = arith.constant 0 : index
    %1 = vector.load %arg4[%c0_1, %c0_2] : memref<32x32xf32, #tpu.memory_space<vmem>>, vector<32x32xf32>
    %cst = arith.constant dense<0.000000e+00> : vector<16x32xf32>
    %2 = tpu.matmul %0, %1, %cst {dimension_numbers = #tpu.dot_dimension_numbers<[1], [0], [0], [1], [0, 0, 1, 1], [], []>} : vector<16x32xf32>, vector<32x32xf32>, vector<16x32xf32> -> vector<16x32xf32>
    %c0_i32 = arith.constant 0 : i32
    %3 = arith.cmpi eq, %arg2, %c0_i32 : i32
    %4 = arith.extui %3 : i1 to i32
    %c0_i32_3 = arith.constant 0 : i32
    %5 = arith.cmpi ne, %4, %c0_i32_3 : i32
    scf.if %5 {
      %c0_8 = arith.constant 0 : index
      %c0_9 = arith.constant 0 : index
      %12 = vector.load %arg6[%c0_8, %c0_9] : memref<16x32xf32, #tpu.memory_space<vmem>>, vector<16x32xf32>
      tpu.vector_store %arg6[%c0_8, %c0_9], %2 {strides = array<i32>} : memref<16x32xf32, #tpu.memory_space<vmem>>, vector<16x32xf32>,
    } else {
    }
    %c0_i32_4 = arith.constant 0 : i32
    %6 = arith.cmpi ne, %arg2, %c0_i32_4 : i32
    %7 = arith.extui %6 : i1 to i32
    %c0_i32_5 = arith.constant 0 : i32
    %8 = arith.cmpi ne, %7, %c0_i32_5 : i32
    scf.if %8 {
      %c0_8 = arith.constant 0 : index
      %c0_9 = arith.constant 0 : index
      %12 = vector.load %arg6[%c0_8, %c0_9] : memref<16x32xf32, #tpu.memory_space<vmem>>, vector<16x32xf32>
      %13 = arith.addf %12, %2 : vector<16x32xf32>
      %c0_10 = arith.constant 0 : index
      %c0_11 = arith.constant 0 : index
      %14 = vector.load %arg6[%c0_10, %c0_11] : memref<16x32xf32, #tpu.memory_space<vmem>>, vector<16x32xf32>
      tpu.vector_store %arg6[%c0_10, %c0_11], %13 {strides = array<i32>} : memref<16x32xf32, #tpu.memory_space<vmem>>, vector<16x32xf32>,
    } else {
    }
    %c0_i32_6 = arith.constant 0 : i32
    %9 = arith.cmpi eq, %arg2, %c0_i32_6 : i32
    %10 = arith.extui %9 : i1 to i32
    %c0_i32_7 = arith.constant 0 : i32
    %11 = arith.cmpi ne, %10, %c0_i32_7 : i32
    scf.if %11 {
      %c0_8 = arith.constant 0 : index
      %c0_9 = arith.constant 0 : index
      %12 = vector.load %arg6[%c0_8, %c0_9] : memref<16x32xf32, #tpu.memory_space<vmem>>, vector<16x32xf32>
      %c0_10 = arith.constant 0 : index
      %c0_11 = arith.constant 0 : index
      %13 = vector.load %arg5[%c0_10, %c0_11] : memref<1x32xf32, #tpu.memory_space<vmem>>, vector<1x32xf32>
      %14 = vector.broadcast %13 : vector<1x32xf32> to vector<16x32xf32>
      %15 = arith.addf %12, %14 : vector<16x32xf32>
      %c0_12 = arith.constant 0 : index
      %c0_13 = arith.constant 0 : index
      %16 = vector.load %arg6[%c0_12, %c0_13] : memref<16x32xf32, #tpu.memory_space<vmem>>, vector<16x32xf32>
      tpu.vector_store %arg6[%c0_12, %c0_13], %15 {strides = array<i32>} : memref<16x32xf32, #tpu.memory_space<vmem>>, vector<16x32xf32>,
    } else {
    }
    return
  }
  func.func @transform_0(%arg0: i32, %arg1: i32, %arg2: i32) -> (i32, i32) {
    %c0_i32 = arith.constant 0 : i32
    return %arg0, %arg2 : i32, i32
  }
  func.func @transform_1(%arg0: i32, %arg1: i32, %arg2: i32) -> (i32, i32) {
    %c0_i32 = arith.constant 0 : i32
    return %arg2, %arg1 : i32, i32
  }
  func.func @transform_2(%arg0: i32, %arg1: i32, %arg2: i32) -> (i32, i32) {
    %c0_i32 = arith.constant 0 : i32
    %c0_i32_0 = arith.constant 0 : i32
    return %c0_i32, %arg1 : i32, i32
  }
  func.func @transform_3(%arg0: i32, %arg1: i32, %arg2: i32) -> (i32, i32) {
    %c0_i32 = arith.constant 0 : i32
    return %arg0, %arg1 : i32, i32
  }
}

</mosaic_0001>

<bundles_post_ra>
// kernel: _aug_linear_pallas.1
= control target key start
LH: loop header
LB: loop body
LE: loop exit
PB: predicated region body
PF: predicated region fallthrough
CT: control target
= control target key end

     0   :  { %vm21_vm0 = vcmask 261120   ;;  %s268_s0 = inlined_call_operand.vmem [shape: f32[16,32], index: 0, kind: input, shape index: {}]   ;;  %s269_s1 = inlined_call_operand.vmem [shape: f32[32,32], index: 1, kind: input, shape index: {}]   ;;  %s270_s2 = inlined_call_operand.vmem [shape: f32[1,32], index: 2, kind: input, shape index: {}]   ;;  %s271_s3 = inlined_call_operand.hbm [shape: f32[16,32], index: 3, kind: output, shape index: {}]  }
   0x1   :  { %v17_v0 = vld [vmem:[%s269_s1] sm:$0xff]  ;;  %v18_v1 = vld [vmem:[%s269_s1 + $0x8] sm:$0xff]  ;;  %v19_v2 = vld [vmem:[%s269_s1 + $0x10] sm:$0xff] }
   0x2   :  { %v171_v3 = vpack.c.bf16 %v18_v1, %v17_v0  ;;  %v20_v4 = vld [vmem:[%s269_s1 + $0x18] sm:$0xff]  ;;  %v15_v5 = vld [vmem:[%s268_s0] sm:$0xff] }
   0x3   :  { %v175_v6 = vpack.c.bf16 %v20_v4, %v19_v2  ;;  %168 = vmatprep.mubr.msk.f32.mxu0 %vm21_vm0, %v15_v5 }
   0x4   :  { %8 = vsyncpa [#allocation3], 0  ;;  %172 = vmatprep.subr.bf16.mxu0 %v171_v3  ;;  %v16_v7 = vld [vmem:[%s268_s0 + $0x8] sm:$0xff]  ;;  %v153_v10 = vld [vmem:[%s270_s2] ss:$0 sm:$0xff]  ;;  %s206_s25 = smov [#allocation2]  }
   0x5   :  { %174 = vmatpush3.bf16.msra.mxu0 %v171_v3  ;;  %s140_s26 = sshll.u32 %s206_s25, 4  ;;  %s141_s26 = int_to_ptr.vmem [resolvable:$true] %s140_s26 }
   0x6   :  { %176 = vmatprep.subr.bf16.mxu0 %v175_v6  ;;  %s182_s0 = scalar_lea.vmem %s141_s26, 256  ;;  %p187_p1 = scmp.lt.s32.totalorder %s141_s26, %s141_s26 }
   0x7   :  { %p183_p0 = scmp.ne.s32.totalorder %s141_s26, %s182_s0  ;;  %p188_p2 = scmp.lt.s32.totalorder %s182_s0, %s182_s0 }
   0x9   :  { %178 = vmatpush3.bf16.msra.mxu0 %v175_v6  ;;  %p189_p3 = por %p188_p2, %p187_p1 }
   0xb   :  { %p190_p4 = pnand %p189_p3, %p183_p0 }
   0xc   :  { %169 = vmatmul.mubr.msk.f32.vlgmr.msra.gmra.mrb[0].mxu0 %vm21_vm0, %v16_v7 }
  0xdf   :  { %v170_v8 = vpop.f32.mrb[0].mxu0 }
  0xe0   :  { %108 = vst.msk [vmem:[#allocation2 + $0x8] sm:$0xff] %vm21_vm0, %v170_v8  ;;  %v94_v9 = vpop.f32.mrb[1].mxu0 }
  0xe1   :  { %107 = vst.msk [vmem:[#allocation2] sm:$0xff] %vm21_vm0, %v94_v9 }
  0xe7   :  { %v123_v11 = vld [vmem:[#allocation2 + $0x8] sm:$0xff] }
  0xe8   :  { %v132_v12 = vadd.f32 %v153_v10, %v123_v11  ;;  %v122_v13 = vld [vmem:[#allocation2] sm:$0xff] }
  0xe9   :  { %v131_v14 = vadd.f32 %v153_v10, %v122_v13 }
  0xea   :  { %134 = vst.msk [vmem:[#allocation2 + $0x8] sm:$0xff] %vm21_vm0, %v132_v12 }
  0xeb   :  { %133 = vst.msk [vmem:[#allocation2] sm:$0xff] %vm21_vm0, %v131_v14 }
  0xec   :  { %193 = shalt.err (!%p190_p4)
}
  0xed   :  { %s194_s28 = scalar_lea.hbm %s271_s3, 256 }
  0xee   :  { %p195_p5 = scmp.ne.s32.totalorder %s271_s3, %s194_s28  ;;  %p198_p6 = scmp.lt.u32.totalorder %s194_s28, %s271_s3 }
  0xf0   :  { %p200_p7 = pnand %p198_p6, %p195_p5 }
  0xf2   :  { %203 = shalt.err (!%p200_p7)
}
  0xf3   :  { %s207_s6 = smov 128   ;;  %s208_s7 = smov 8  }
  0xf4   :  { %146 = dma.vmem_to_hbm [thread:$0]  %s141_s26, 256, %s271_s3, [#allocation3], %s207_s6, %s207_s6, %s208_s7  }
  0xf5   :  { %204 = dma.done.wait [#allocation3], 256  }
  0xf6   :  { %205 = vsyncadd [#allocation3], 4294967040 }
  0xf7   :  { %150 = vsyncpa [#allocation3], 1 }

</bundles_post_ra>
